<compile_context>
chip_gen: v7x
topology: tpu7x:2x2x1
jax: 0.10.0
libtpu: 0.0.40
codegen_flags: <defaults>
</compile_context>

<pallas_src>
import jax
import jax.numpy as jnp
from jax.experimental import pallas as pl
from jax.experimental.pallas import tpu as pltpu

IN_DIM = 4
HID = 256
OUT_DIM = 5
OUT_PAD = 128          # lane-dense padded output width


def _round_up(n, m):
    return ((n + m - 1) // m) * m


def qnet_kernel(x_ref, w1_ref, b1_ref, w2_ref, b2_ref, w3_ref, b3_ref, o_ref):
    # ---- fc1 + ReLU as a 4-term VPU broadcast-FMA (K=4 would waste the MXU).
    x = x_ref[...]                                   # (TB, 4)  f32
    h1 = b1_ref[...]                                 # (1, 256) f32 (broadcasts)
    for k in range(IN_DIM):                          # static unroll
        h1 = h1 + x[:, k:k + 1] * w1_ref[k:k + 1, :]
    h1 = jnp.maximum(h1, 0.0)                        # (TB, 256) f32

    # ---- fc2 + ReLU on the MXU: bf16 inputs, f32 accumulation.
    h2 = jnp.dot(h1.astype(jnp.bfloat16), w2_ref[...],
                 preferred_element_type=jnp.float32)
    h2 = jnp.maximum(h2 + b2_ref[...], 0.0)          # (TB, 256) f32

    # ---- fc3, output padded to 128 lanes for an unmasked lane-dense store.
    o = jnp.dot(h2.astype(jnp.bfloat16), w3_ref[...],
                preferred_element_type=jnp.float32)
    o_ref[...] = (o + b3_ref[...]).astype(o_ref.dtype)


def qnet_forward(x, params, *, tb_max=1024):
    """Qnet forward: x (B, 4) f32 -> (B, 5) f32."""
    w1, b1, w2, b2, w3, b3 = params
    B = x.shape[0]

    # bf16 weights for the MXU matmuls (accumulation stays f32 in-kernel).
    w2_b = w2.astype(jnp.bfloat16)
    # Lane-dense fc3: zero-pad to 128 output columns.
    w3_p = jnp.zeros((HID, OUT_PAD), jnp.bfloat16)
    w3_p = w3_p.at[:, :OUT_DIM].set(w3.astype(jnp.bfloat16))
    b3_p = jnp.zeros((1, OUT_PAD), jnp.float32)
    b3_p = b3_p.at[:, :OUT_DIM].set(b3)

    # Batch tiling: one block for small B, TB<=tb_max rows per grid step
    # otherwise (tb_max=1024 keeps double-buffered tiles well under the
    # 32 MiB scoped / 64 MiB physical v7x VMEM budget).
    TB = _round_up(min(tb_max, max(B, 8)), 8)
    B_pad = _round_up(B, TB)
    if B_pad != B:
        x = jnp.pad(x, ((0, B_pad - B), (0, 0)))
    grid = (B_pad // TB,)

    flops = 2 * B_pad * (IN_DIM * HID + HID * HID + HID * OUT_PAD)
    bytes_accessed = (B_pad * IN_DIM * 4 + B_pad * OUT_PAD * 4
                      + w1.size * 4 + b1.size * 4
                      + w2_b.size * 2 + b2.size * 4
                      + w3_p.size * 2 + b3_p.size * 4)

    def const(shape):
        return pl.BlockSpec(shape, lambda i: (0, 0))

    out = pl.pallas_call(
        qnet_kernel,
        out_shape=jax.ShapeDtypeStruct((B_pad, OUT_PAD), jnp.float32),
        grid=grid,
        in_specs=[
            pl.BlockSpec((TB, IN_DIM), lambda i: (i, 0)),   # x tile
            const((IN_DIM, HID)),                           # w1 (resident)
            const((1, HID)),                                # b1
            const((HID, HID)),                              # w2 (bf16, resident)
            const((1, HID)),                                # b2
            const((HID, OUT_PAD)),                          # w3 padded (bf16)
            const((1, OUT_PAD)),                            # b3 padded
        ],
        out_specs=pl.BlockSpec((TB, OUT_PAD), lambda i: (i, 0)),
        compiler_params=pltpu.CompilerParams(
            dimension_semantics=("parallel",)),
        cost_estimate=pl.CostEstimate(
            flops=flops, transcendentals=0, bytes_accessed=bytes_accessed),
    )(x, w1, b1, w2_b, b2, w3_p, b3_p)

    return out[:B, :OUT_DIM]


def init_params(key):
    """Deterministic init mimicking PyTorch nn.Linear default (uniform +-1/sqrt(fan_in))."""
    def linear(key, fan_in, fan_out):
        kw, kb = jax.random.split(key)
        bound = 1.0 / (fan_in ** 0.5)
        # stored as (in, out) so the kernel does x @ W
        w = jax.random.uniform(kw, (fan_in, fan_out), jnp.float32, -bound, bound)
        b = jax.random.uniform(kb, (1, fan_out), jnp.float32, -bound, bound)
        return w, b

    k1, k2, k3 = jax.random.split(key, 3)
    w1, b1 = linear(k1, IN_DIM, HID)
    w2, b2 = linear(k2, HID, HID)
    w3, b3 = linear(k3, HID, OUT_DIM)
    return (w1, b1, w2, b2, w3, b3)


def qnet_reference(x, params):
    """Pure-JAX f32 reference for correctness check."""
    w1, b1, w2, b2, w3, b3 = params
    h = jnp.maximum(x @ w1 + b1, 0.0)
    h = jnp.maximum(h @ w2 + b2, 0.0)
    return h @ w3 + b3


if __name__ == "__main__":
    key = jax.random.PRNGKey(0)
    kp, kx1, kx2 = jax.random.split(key, 3)

    params = init_params(kp)
    fwd = jax.jit(qnet_forward)

    # Matches the module's training batch_size=128 (4-dim state observations).
    x = jax.random.normal(kx1, (128, IN_DIM), jnp.float32)
    out = jax.block_until_ready(fwd(x, params))
    ref = qnet_reference(x, params)
    assert out.shape == (128, OUT_DIM), out.shape
    # bf16 matmul inputs (f32 accumulate) -> loosened tolerance vs f32 reference.
    assert jnp.allclose(out, ref, atol=3e-2, rtol=3e-2), "mismatch vs reference (B=128)"

    # Ragged batch to exercise the pad/slice path.
    x2 = jax.random.normal(kx2, (37, IN_DIM), jnp.float32)
    out2 = jax.block_until_ready(fwd(x2, params))
    ref2 = qnet_reference(x2, params)
    assert out2.shape == (37, OUT_DIM), out2.shape
    assert jnp.allclose(out2, ref2, atol=3e-2, rtol=3e-2), "mismatch vs reference (B=37)"

    print("KERNEL_OK")
</pallas_src>

<mosaic_0001>
module attributes {stable_mosaic.version = 11 : i64} {
  func.func @qnet_kernel(%arg0: i32, %arg1: memref<128x4xf32, #tpu.memory_space<vmem>>, %arg2: memref<4x256xf32, #tpu.memory_space<vmem>>, %arg3: memref<1x256xf32, #tpu.memory_space<vmem>>, %arg4: memref<256x256xbf16, #tpu.memory_space<vmem>>, %arg5: memref<1x256xf32, #tpu.memory_space<vmem>>, %arg6: memref<256x128xbf16, #tpu.memory_space<vmem>>, %arg7: memref<1x128xf32, #tpu.memory_space<vmem>>, %arg8: memref<128x128xf32, #tpu.memory_space<vmem>>) attributes {dimension_semantics = [#tpu.dimension_semantics<parallel>], iteration_bounds = array<i64: 1>, scalar_prefetch = 0 : i64, scratch_operands = 0 : i64, tpu.core_type = #tpu.core_type<tc>, window_params = [{transform_indices = @transform_0, window_bounds = array<i64: 128, 4>}, {pipeline_mode = #tpu.pipeline_mode<synchronous>, transform_indices = @transform_1, window_bounds = array<i64: 4, 256>}, {pipeline_mode = #tpu.pipeline_mode<synchronous>, transform_indices = @transform_2, window_bounds = array<i64: 1, 256>}, {pipeline_mode = #tpu.pipeline_mode<synchronous>, transform_indices = @transform_3, window_bounds = array<i64: 256, 256>}, {pipeline_mode = #tpu.pipeline_mode<synchronous>, transform_indices = @transform_4, window_bounds = array<i64: 1, 256>}, {pipeline_mode = #tpu.pipeline_mode<synchronous>, transform_indices = @transform_5, window_bounds = array<i64: 256, 128>}, {pipeline_mode = #tpu.pipeline_mode<synchronous>, transform_indices = @transform_6, window_bounds = array<i64: 1, 128>}, {transform_indices = @transform_7, window_bounds = array<i64: 128, 128>}]} {
    %c0 = arith.constant 0 : index
    %c0_0 = arith.constant 0 : index
    %0 = vector.load %arg1[%c0, %c0_0] : memref<128x4xf32, #tpu.memory_space<vmem>>, vector<128x4xf32>
    %c0_1 = arith.constant 0 : index
    %c0_2 = arith.constant 0 : index
    %1 = vector.load %arg3[%c0_1, %c0_2] : memref<1x256xf32, #tpu.memory_space<vmem>>, vector<1x256xf32>
    %2 = vector.extract_strided_slice %0 {offsets = [0, 0], sizes = [128, 1], strides = [1, 1]} : vector<128x4xf32> to vector<128x1xf32>
    %c0_3 = arith.constant 0 : index
    %c0_4 = arith.constant 0 : index
    %3 = vector.load %arg2[%c0_3, %c0_4] : memref<4x256xf32, #tpu.memory_space<vmem>>, vector<1x256xf32>
    %4 = vector.broadcast %2 : vector<128x1xf32> to vector<128x256xf32>
    %5 = vector.broadcast %3 : vector<1x256xf32> to vector<128x256xf32>
    %6 = arith.mulf %4, %5 : vector<128x256xf32>
    %7 = vector.broadcast %1 : vector<1x256xf32> to vector<128x256xf32>
    %8 = arith.addf %7, %6 : vector<128x256xf32>
    %9 = vector.extract_strided_slice %0 {offsets = [0, 1], sizes = [128, 1], strides = [1, 1]} : vector<128x4xf32> to vector<128x1xf32>
    %c1 = arith.constant 1 : index
    %c0_5 = arith.constant 0 : index
    %10 = vector.load %arg2[%c1, %c0_5] : memref<4x256xf32, #tpu.memory_space<vmem>>, vector<1x256xf32>
    %11 = vector.broadcast %9 : vector<128x1xf32> to vector<128x256xf32>
    %12 = vector.broadcast %10 : vector<1x256xf32> to vector<128x256xf32>
    %13 = arith.mulf %11, %12 : vector<128x256xf32>
    %14 = arith.addf %8, %13 : vector<128x256xf32>
    %15 = vector.extract_strided_slice %0 {offsets = [0, 2], sizes = [128, 1], strides = [1, 1]} : vector<128x4xf32> to vector<128x1xf32>
    %c2 = arith.constant 2 : index
    %c0_6 = arith.constant 0 : index
    %16 = vector.load %arg2[%c2, %c0_6] : memref<4x256xf32, #tpu.memory_space<vmem>>, vector<1x256xf32>
    %17 = vector.broadcast %15 : vector<128x1xf32> to vector<128x256xf32>
    %18 = vector.broadcast %16 : vector<1x256xf32> to vector<128x256xf32>
    %19 = arith.mulf %17, %18 : vector<128x256xf32>
    %20 = arith.addf %14, %19 : vector<128x256xf32>
    %21 = vector.extract_strided_slice %0 {offsets = [0, 3], sizes = [128, 1], strides = [1, 1]} : vector<128x4xf32> to vector<128x1xf32>
    %c3 = arith.constant 3 : index
    %c0_7 = arith.constant 0 : index
    %22 = vector.load %arg2[%c3, %c0_7] : memref<4x256xf32, #tpu.memory_space<vmem>>, vector<1x256xf32>
    %23 = vector.broadcast %21 : vector<128x1xf32> to vector<128x256xf32>
    %24 = vector.broadcast %22 : vector<1x256xf32> to vector<128x256xf32>
    %25 = arith.mulf %23, %24 : vector<128x256xf32>
    %26 = arith.addf %20, %25 : vector<128x256xf32>
    %cst = arith.constant 0.000000e+00 : f32
    %27 = vector.broadcast %cst : f32 to vector<128x256xf32>
    %28 = arith.maximumf %26, %27 : vector<128x256xf32>
    %29 = arith.truncf %28 : vector<128x256xf32> to vector<128x256xbf16>
    %c0_8 = arith.constant 0 : index
    %c0_9 = arith.constant 0 : index
    %30 = vector.load %arg4[%c0_8, %c0_9] : memref<256x256xbf16, #tpu.memory_space<vmem>>, vector<256x256xbf16>
    %cst_10 = arith.constant dense<0.000000e+00> : vector<128x256xf32>
    %31 = tpu.matmul %29, %30, %cst_10 {dimension_numbers = #tpu.dot_dimension_numbers<[1], [0], [0], [1], [0, 0, 1, 1], [], []>} : vector<128x256xbf16>, vector<256x256xbf16>, vector<128x256xf32> -> vector<128x256xf32>
    %c0_11 = arith.constant 0 : index
    %c0_12 = arith.constant 0 : index
    %32 = vector.load %arg5[%c0_11, %c0_12] : memref<1x256xf32, #tpu.memory_space<vmem>>, vector<1x256xf32>
    %33 = vector.broadcast %32 : vector<1x256xf32> to vector<128x256xf32>
    %34 = arith.addf %31, %33 : vector<128x256xf32>
    %cst_13 = arith.constant 0.000000e+00 : f32
    %35 = vector.broadcast %cst_13 : f32 to vector<128x256xf32>
    %36 = arith.maximumf %34, %35 : vector<128x256xf32>
    %37 = arith.truncf %36 : vector<128x256xf32> to vector<128x256xbf16>
    %c0_14 = arith.constant 0 : index
    %c0_15 = arith.constant 0 : index
    %38 = vector.load %arg6[%c0_14, %c0_15] : memref<256x128xbf16, #tpu.memory_space<vmem>>, vector<256x128xbf16>
    %cst_16 = arith.constant dense<0.000000e+00> : vector<128x128xf32>
    %39 = tpu.matmul %37, %38, %cst_16 {dimension_numbers = #tpu.dot_dimension_numbers<[1], [0], [0], [1], [0, 0, 1, 1], [], []>} : vector<128x256xbf16>, vector<256x128xbf16>, vector<128x128xf32> -> vector<128x128xf32>
    %c0_17 = arith.constant 0 : index
    %c0_18 = arith.constant 0 : index
    %40 = vector.load %arg7[%c0_17, %c0_18] : memref<1x128xf32, #tpu.memory_space<vmem>>, vector<1x128xf32>
    %41 = vector.broadcast %40 : vector<1x128xf32> to vector<128x128xf32>
    %42 = arith.addf %39, %41 : vector<128x128xf32>
    %c0_19 = arith.constant 0 : index
    %c0_20 = arith.constant 0 : index
    %43 = vector.load %arg8[%c0_19, %c0_20] : memref<128x128xf32, #tpu.memory_space<vmem>>, vector<128x128xf32>
    tpu.vector_store %arg8[%c0_19, %c0_20], %42 {strides = array<i32>} : memref<128x128xf32, #tpu.memory_space<vmem>>, vector<128x128xf32>,
    return
  }
  func.func @transform_0(%arg0: i32) -> (i32, i32) {
    %c0_i32 = arith.constant 0 : i32
    %c0_i32_0 = arith.constant 0 : i32
    return %arg0, %c0_i32 : i32, i32
  }
  func.func @transform_1(%arg0: i32) -> (i32, i32) {
    %c0_i32 = arith.constant 0 : i32
    %c0_i32_0 = arith.constant 0 : i32
    %c0_i32_1 = arith.constant 0 : i32
    return %c0_i32, %c0_i32_0 : i32, i32
  }
  func.func @transform_2(%arg0: i32) -> (i32, i32) {
    %c0_i32 = arith.constant 0 : i32
    %c0_i32_0 = arith.constant 0 : i32
    %c0_i32_1 = arith.constant 0 : i32
    return %c0_i32, %c0_i32_0 : i32, i32
  }
  func.func @transform_3(%arg0: i32) -> (i32, i32) {
    %c0_i32 = arith.constant 0 : i32
    %c0_i32_0 = arith.constant 0 : i32
    %c0_i32_1 = arith.constant 0 : i32
    return %c0_i32, %c0_i32_0 : i32, i32
  }
  func.func @transform_4(%arg0: i32) -> (i32, i32) {
    %c0_i32 = arith.constant 0 : i32
    %c0_i32_0 = arith.constant 0 : i32
    %c0_i32_1 = arith.constant 0 : i32
    return %c0_i32, %c0_i32_0 : i32, i32
  }
  func.func @transform_5(%arg0: i32) -> (i32, i32) {
    %c0_i32 = arith.constant 0 : i32
    %c0_i32_0 = arith.constant 0 : i32
    %c0_i32_1 = arith.constant 0 : i32
    return %c0_i32, %c0_i32_0 : i32, i32
  }
  func.func @transform_6(%arg0: i32) -> (i32, i32) {
    %c0_i32 = arith.constant 0 : i32
    %c0_i32_0 = arith.constant 0 : i32
    %c0_i32_1 = arith.constant 0 : i32
    return %c0_i32, %c0_i32_0 : i32, i32
  }
  func.func @transform_7(%arg0: i32) -> (i32, i32) {
    %c0_i32 = arith.constant 0 : i32
    %c0_i32_0 = arith.constant 0 : i32
    return %arg0, %c0_i32 : i32, i32
  }
}

</mosaic_0001>

<bundles_post_ra>
// kernel: qnet_forward.1
= control target key start
LH: loop header
LB: loop body
LE: loop exit
PB: predicated region body
PF: predicated region fallthrough
CT: control target
= control target key end

     0   :  { %v1523_v0 = vmov 2   ;;  %v1524_v1 = vmov 1   ;;  %v1525_v9 = vmov 3   ;;  %v1526_v18 = vmov 0   ;;  %s2248_s0 = inlined_call_operand.vmem [shape: f32[128,4], index: 0, kind: input, shape index: {}]   ;;  %s2249_s3 = inlined_call_operand.vmem [shape: bf16[256,256], index: 3, kind: input, shape index: {}]   ;;  %s2250_s1 = inlined_call_operand.vmem [shape: f32[4,256], index: 1, kind: input, shape index: {}]   ;;  %s2251_s2 = inlined_call_operand.vmem [shape: f32[1,256], index: 2, kind: input, shape index: {}]   ;;  %s2252_s5 = inlined_call_operand.vmem [shape: bf16[256,128], index: 5, kind: input, shape index: {}]   ;;  %s2253_s4 = inlined_call_operand.vmem [shape: f32[1,256], index: 4, kind: input, shape index: {}]   ;;  %s2254_s6 = inlined_call_operand.vmem [shape: f32[1,128], index: 6, kind: input, shape index: {}]   ;;  %s2255_s7 = inlined_call_operand.vmem [shape: f32[128,128], index: 7, kind: output, shape index: {}]  }
   0x1   :  { %1420 = vset.pattern.permute.xlu0 %v1523_v0  ;;  %1419 = vset.pattern.permute.xlu1 %v1524_v1  ;;  %v1572_v2 = vld [vmem:[%s2248_s0] sm:$0xff]  ;;  %v1579_v3 = vld [vmem:[%s2248_s0 + $0x18] sm:$0xff]  ;;  %v1584_v4 = vld [vmem:[%s2248_s0 + $0x8] sm:$0xff]  ;;  %v126_v62 = vlaneseq }
   0x2   :  { %355 = vperm.xlu0 %1420, %v1572_v2   ;;  %214 = vperm.xlu1 %1419, %v1572_v2   ;;  %v1459_v5 = vld [vmem:[%s2249_s3 + $0x4] ss:$8 sps:$4 sm:$0xff]   ;;  %v1461_v6 = vld [vmem:[%s2249_s3] ss:$8 sps:$4 sm:$0xff]   ;;  %v1462_v7 = vld [vmem:[%s2249_s3 + $0x14] ss:$8 sps:$4 sm:$0xff]  }
   0x3   :  { %886 = vmatprep.subr.bf16.mxu0 %v1459_v5  ;;  %v1464_v8 = vld [vmem:[%s2249_s3 + $0x10] ss:$8 sps:$4 sm:$0xff]   ;;  %v1465_v10 = vld [vmem:[%s2249_s3 + $0x24] ss:$8 sps:$4 sm:$0xff]   ;;  %v1467_v12 = vld [vmem:[%s2249_s3 + $0x20] ss:$8 sps:$4 sm:$0xff]  }
   0x4   :  { %887 = vmatpush1.bf16.msra.mxu0 %v1461_v6  ;;  %v1610_v11 = vld [vmem:[%s2248_s0 + $0x20] sm:$0xff]  ;;  %v1618_v13 = vld [vmem:[%s2248_s0 + $0x38] sm:$0xff]  ;;  %v29_v16 = vld [vmem:[%s2248_s0 + $0x10] sm:$0xff] }
   0x5   :  { %888 = vmatprep.subr.bf16.mxu0 %v1462_v7  ;;  %v1468_v14 = vld [vmem:[%s2249_s3 + $0x34] ss:$8 sps:$4 sm:$0xff]   ;;  %v1470_v15 = vld [vmem:[%s2249_s3 + $0x30] ss:$8 sps:$4 sm:$0xff]   ;;  %v1471_v17 = vld [vmem:[%s2249_s3 + $0x44] ss:$8 sps:$4 sm:$0xff]  }
   0x6   :  { %367 = vperm.xlu0 %1420, %v1579_v3   ;;  %218 = vperm.xlu1 %1419, %v1584_v4   ;;  %v1473_v19 = vld [vmem:[%s2249_s3 + $0x40] ss:$8 sps:$4 sm:$0xff]   ;;  %v1474_v20 = vld [vmem:[%s2249_s3 + $0x54] ss:$8 sps:$4 sm:$0xff]   ;;  %v1476_v22 = vld [vmem:[%s2249_s3 + $0x50] ss:$8 sps:$4 sm:$0xff]  }
   0x7   :  { %v1648_v21 = vld [vmem:[%s2248_s0 + $0x28] sm:$0xff]  ;;  %v1661_v24 = vld [vmem:[%s2248_s0 + $0x40] sm:$0xff]  ;;  %v1480_v26 = vld [vmem:[%s2249_s3 + $0x74] ss:$8 sps:$4 sm:$0xff]  }
   0x8   :  { %889 = vmatpush1.bf16.msra.mxu0 %v1464_v8  ;;  %v1477_v23 = vld [vmem:[%s2249_s3 + $0x64] ss:$8 sps:$4 sm:$0xff]   ;;  %v1479_v25 = vld [vmem:[%s2249_s3 + $0x60] ss:$8 sps:$4 sm:$0xff]   ;;  %v1674_v27 = vld [vmem:[%s2248_s0 + $0x58] sm:$0xff] }
   0x9   :  { %890 = vmatprep.subr.bf16.mxu0 %v1465_v10  ;;  %v1482_v28 = vld [vmem:[%s2249_s3 + $0x70] ss:$8 sps:$4 sm:$0xff]   ;;  %v1483_v29 = vld [vmem:[%s2249_s3 + $0x84] ss:$8 sps:$4 sm:$0xff]   ;;  %v1485_v30 = vld [vmem:[%s2249_s3 + $0x80] ss:$8 sps:$4 sm:$0xff]  }
   0xa   :  { %1426 = vset.pattern.permute.xlu0 %v1525_v9  ;;  %1421 = vset.pattern.permute.xlu1 %v1523_v0  ;;  %v1486_v31 = vld [vmem:[%s2249_s3 + $0x94] ss:$8 sps:$4 sm:$0xff]   ;;  %v1488_v32 = vld [vmem:[%s2249_s3 + $0x90] ss:$8 sps:$4 sm:$0xff]   ;;  %v1489_v33 = vld [vmem:[%s2249_s3 + $0xa4] ss:$8 sps:$4 sm:$0xff]  }
   0xb   :  { %500 = vperm.xlu0 %1426, %v1584_v4   ;;  %359 = vperm.xlu1 %1421, %v1584_v4   ;;  %v1491_v34 = vld [vmem:[%s2249_s3 + $0xa0] ss:$8 sps:$4 sm:$0xff]   ;;  %v1492_v35 = vld [vmem:[%s2249_s3 + $0xb4] ss:$8 sps:$4 sm:$0xff]   ;;  %v1494_v36 = vld [vmem:[%s2249_s3 + $0xb0] ss:$8 sps:$4 sm:$0xff]  }
   0xc   :  { %891 = vmatpush1.bf16.msra.mxu0 %v1467_v12  ;;  %v1495_v37 = vld [vmem:[%s2249_s3 + $0xc4] ss:$8 sps:$4 sm:$0xff]   ;;  %v1722_v38 = vld [vmem:[%s2248_s0 + $0x50] sm:$0xff]  ;;  %v1497_v39 = vld [vmem:[%s2249_s3 + $0xc0] ss:$8 sps:$4 sm:$0xff]  }
   0xd   :  { %892 = vmatprep.subr.bf16.mxu0 %v1468_v14  ;;  %v1498_v40 = vld [vmem:[%s2249_s3 + $0xd4] ss:$8 sps:$4 sm:$0xff]   ;;  %v1735_v41 = vld [vmem:[%s2248_s0 + $0x68] sm:$0xff]  ;;  %v1500_v42 = vld [vmem:[%s2249_s3 + $0xd0] ss:$8 sps:$4 sm:$0xff]  }
   0xe   :  { %v1501_v43 = vld [vmem:[%s2249_s3 + $0xe4] ss:$8 sps:$4 sm:$0xff]   ;;  %v1503_v44 = vld [vmem:[%s2249_s3 + $0xe0] ss:$8 sps:$4 sm:$0xff]   ;;  %v1504_v45 = vld [vmem:[%s2249_s3 + $0xf4] ss:$8 sps:$4 sm:$0xff]  }
   0xf   :  { %512 = vperm.xlu0 %1426, %v1610_v11   ;;  %1422 = vset.pattern.permute.xlu1 %v1525_v9  ;;  %v33_v46 = vld [vmem:[%s2248_s0 + $0x30] sm:$0xff]  ;;  %v36_v48 = vld [vmem:[%s2248_s0 + $0x48] sm:$0xff]  ;;  %v1767_v49 = vld [vmem:[%s2248_s0 + $0x60] sm:$0xff] }
  0x10   :  { %496 = vperm.xlu1 %1422, %v1572_v2   ;;  %893 = vmatpush1.bf16.msra.mxu0 %v1470_v15  ;;  %v1506_v47 = vld [vmem:[%s2249_s3 + $0xf0] ss:$8 sps:$4 sm:$0xff]   ;;  %v1299_v8 = vld [vmem:[%s2250_s1 + $0x1] ss:$4 sm:$0x3] }
  0x11   :  { %894 = vmatprep.subr.bf16.mxu0 %v1471_v17  ;;  %v1781_v50 = vld [vmem:[%s2248_s0 + $0x70] sm:$0xff]  ;;  %v1789_v51 = vld [vmem:[%s2248_s0 + $0x78] sm:$0xff]  ;;  %v44_v12 = vld [vmem:[%s2250_s1] ss:$4 sm:$0x3] }
  0x12   :  { %v1301_v15 = vld [vmem:[%s2250_s1 + $0x3] ss:$4 sm:$0x3] }
  0x13   :  { %524 = vperm.xlu0 %1426, %v1618_v13  }
  0x14   :  { %1423 = vset.pattern.permute.xlu1 %v1526_v18  ;;  %895 = vmatpush1.bf16.msra.mxu0 %v1473_v19 }
  0x15   :  { %57 = vperm.xlu1 %1423, %v29_v16   ;;  %896 = vmatprep.subr.bf16.mxu0 %v1474_v20 }
  0x17   :  { %1436 = vset.pattern.permute.xlu0 %v1524_v1 }
  0x18   :  { %222 = vperm.xlu0 %1436, %v29_v16   ;;  %897 = vmatpush1.bf16.msra.mxu0 %v1476_v22 }
  0x19   :  { %62 = vperm.xlu1 %1423, %v1579_v3   ;;  %898 = vmatprep.subr.bf16.mxu0 %v1477_v23 }
  0x1c   :  { %234 = vperm.xlu0 %1436, %v1648_v21   ;;  %899 = vmatpush1.bf16.msra.mxu0 %v1479_v25 }
  0x1d   :  { %1424 = vset.pattern.permute.xlu1 %v1524_v1  ;;  %900 = vmatprep.subr.bf16.mxu0 %v1480_v26 }
  0x1e   :  { %226 = vperm.xlu1 %1424, %v1579_v3  }
  0x20   :  { %246 = vperm.xlu0 %1436, %v1661_v24   ;;  %901 = vmatpush1.bf16.msra.mxu0 %v1482_v28 }
  0x21   :  { %902 = vmatprep.subr.bf16.mxu0 %v1483_v29 }
  0x22   :  { %1425 = vset.pattern.permute.xlu1 %v1523_v0 }
  0x23   :  { %363 = vperm.xlu1 %1425, %v29_v16  }
  0x24   :  { %258 = vperm.xlu0 %1436, %v1674_v27   ;;  %903 = vmatpush1.bf16.msra.mxu0 %v1485_v30 }
  0x25   :  { %904 = vmatprep.subr.bf16.mxu0 %v1486_v31 }
  0x27   :  { %1427 = vset.pattern.permute.xlu1 %v1525_v9 }
  0x28   :  { %1443 = vset.pattern.permute.xlu0 %v1526_v18  ;;  %504 = vperm.xlu1 %1427, %v29_v16   ;;  %v43_v16 = vld [vmem:[%s2251_s2] sm:$0x3] }
  0x29   :  { %47 = vperm.xlu0 %1443, %v1572_v2   ;;  %905 = vmatpush1.bf16.msra.mxu0 %v1488_v32 }
  0x2a   :  { %906 = vmatprep.subr.bf16.mxu0 %v1489_v33 }
  0x2c   :  { %508 = vperm.xlu1 %1427, %v1579_v3   ;;  %v127_v3 = vshrl.u32 %v126_v62, 7 }
  0x2d   :  { %52 = vperm.xlu0 %1443, %v1584_v4   ;;  %907 = vmatpush1.bf16.msra.mxu0 %v1491_v34 }
  0x2e   :  { %908 = vmatprep.subr.bf16.mxu0 %v1492_v35  ;;  %v1826_v6 = vsub.s32 0, %v127_v3  ;;  %v1828_v7 = vsub.s32 1, %v127_v3 }
  0x30   :  { %1428 = vset.pattern.permute.xlu1 %v1526_v18  ;;  %v1846_v14 = vrot.slane %v1299_v8, %v1828_v7  ;;  %v1867_v22 = vrot.slane %v44_v12, %v1828_v7  ;;  %v1870_v23 = vrot.slane %v1301_v15, %v1826_v6  ;;  %v1876_v25 = vrot.slane %v44_v12, %v1826_v6 }
  0x31   :  { %72 = vperm.xlu1 %1428, %v1648_v21   ;;  %67 = vperm.xlu0 %1443, %v1610_v11   ;;  %v1879_v26 = vrot.slane %v43_v16, %v1826_v6  ;;  %v1884_v29 = vrot.slane %v43_v16, %v1828_v7 }
  0x32   :  { %909 = vmatpush1.bf16.msra.mxu0 %v1494_v36 }
  0x33   :  { %910 = vmatprep.subr.bf16.mxu0 %v1495_v37 }
  0x35   :  { %1429 = vset.pattern.permute.xlu1 %v1524_v1  ;;  %82 = vperm.xlu0 %1443, %v1618_v13  }
  0x36   :  { %230 = vperm.xlu1 %1429, %v1610_v11   ;;  %911 = vmatpush1.bf16.msra.mxu0 %v1497_v39 }
  0x37   :  { %912 = vmatprep.subr.bf16.mxu0 %v1498_v40 }
  0x39   :  { %97 = vperm.xlu0 %1443, %v1722_v38  }
  0x3a   :  { %1430 = vset.pattern.permute.xlu1 %v1523_v0  ;;  %913 = vmatpush1.bf16.msra.mxu0 %v1500_v42 }
  0x3b   :  { %371 = vperm.xlu1 %1430, %v1610_v11   ;;  %914 = vmatprep.subr.bf16.mxu0 %v1501_v43  ;;  %v1300_v11 = vld [vmem:[%s2250_s1 + $0x2] ss:$4 sm:$0x3] }
  0x3c   :  { %v1861_v20 = vrot.slane %v1300_v11, %v1826_v6 }
  0x3d   :  { %112 = vperm.xlu0 %1443, %v1735_v41  }
  0x3e   :  { %915 = vmatpush1.bf16.msra.mxu0 %v1503_v44 }
  0x3f   :  { %375 = vperm.xlu1 %1430, %v1648_v21   ;;  %916 = vmatprep.subr.bf16.mxu0 %v1504_v45 }
  0x41   :  { %1447 = vset.pattern.permute.xlu0 %v1523_v0 }
  0x42   :  { %379 = vperm.xlu0 %1447, %v33_v46   ;;  %917 = vmatpush1.bf16.msra.mxu0 %v1506_v47 }
  0x43   :  { %1431 = vset.pattern.permute.xlu1 %v1525_v9 }
  0x44   :  { %516 = vperm.xlu1 %1431, %v1648_v21   ;;  %v1864_v21 = vrot.slane %v1300_v11, %v1828_v7 }
  0x46   :  { %391 = vperm.xlu0 %1447, %v36_v48  }
  0x48   :  { %1432 = vset.pattern.permute.xlu1 %v1526_v18 }
  0x49   :  { %77 = vperm.xlu1 %1432, %v33_v46  }
  0x4a   :  { %403 = vperm.xlu0 %1447, %v1767_v49  }
  0x4d   :  { %1433 = vset.pattern.permute.xlu1 %v1524_v1 }
  0x4e   :  { %238 = vperm.xlu1 %1433, %v33_v46   ;;  %1449 = vset.pattern.permute.xlu0 %v1525_v9 }
  0x4f   :  { %536 = vperm.xlu0 %1449, %v1722_v38  }
  0x52   :  { %242 = vperm.xlu1 %1433, %v1618_v13  }
  0x53   :  { %548 = vperm.xlu0 %1449, %v1735_v41  }
  0x56   :  { %1434 = vset.pattern.permute.xlu1 %v1523_v0 }
  0x57   :  { %383 = vperm.xlu1 %1434, %v1618_v13   ;;  %1453 = vset.pattern.permute.xlu0 %v1524_v1  ;;  %v1843_v13 = vrot.slane %v1299_v8, %v1826_v6 }
  0x58   :  { %270 = vperm.xlu0 %1453, %v1781_v50  }
  0x5b   :  { %1435 = vset.pattern.permute.xlu1 %v1525_v9 }
  0x5c   :  { %520 = vperm.xlu1 %1435, %v33_v46   ;;  %1456 = vset.pattern.permute.xlu0 %v1523_v0 }
  0x5d   :  { %415 = vperm.xlu0 %1456, %v1789_v51  }
  0x60   :  { %1437 = vset.pattern.permute.xlu1 %v1526_v18 }
  0x61   :  { %87 = vperm.xlu1 %1437, %v1661_v24   ;;  %1458 = vset.pattern.permute.xlu0 %v1525_v9 }
  0x65   :  { %92 = vperm.xlu1 %1437, %v36_v48  }
  0x69   :  { %1438 = vset.pattern.permute.xlu1 %v1524_v1 }
  0x6a   :  { %250 = vperm.xlu1 %1438, %v36_v48  }
  0x6e   :  { %1439 = vset.pattern.permute.xlu1 %v1523_v0 }
  0x6f   :  { %387 = vperm.xlu1 %1439, %v1661_v24  }
  0x73   :  { %1440 = vset.pattern.permute.xlu1 %v1525_v9 }
  0x74   :  { %528 = vperm.xlu1 %1440, %v1661_v24   ;;  %v1873_v24 = vrot.slane %v1301_v15, %v1828_v7 }
  0x78   :  { %532 = vperm.xlu1 %1440, %v36_v48  }
  0x7c   :  { %1441 = vset.pattern.permute.xlu1 %v1526_v18 }
  0x7d   :  { %102 = vperm.xlu1 %1441, %v1674_v27  }
  0x81   :  { %1442 = vset.pattern.permute.xlu1 %v1524_v1  ;;  %v215_v52 = vpop.permute.xlu1 %214  ;;  %v356_v53 = vpop.permute.xlu0 %355 }
  0x82   :  { %254 = vperm.xlu1 %1442, %v1722_v38   ;;  %v289_v28 = vmul.f32 %v1846_v14, %v215_v52  ;;  %v429_v31 = vmul.f32 %v1861_v20, %v356_v53  ;;  %v430_v32 = vmul.f32 %v1864_v21, %v356_v53 }
  0x85   :  { %v219_v54 = vpop.permute.xlu1 %218  ;;  %v368_v55 = vpop.permute.xlu0 %367 }
  0x86   :  { %1444 = vset.pattern.permute.xlu1 %v1523_v0  ;;  %v290_v33 = vmul.f32 %v1843_v13, %v219_v54  ;;  %v291_v34 = vmul.f32 %v1846_v14, %v219_v54  ;;  %v435_v36 = vmul.f32 %v1861_v20, %v368_v55  ;;  %v436_v37 = vmul.f32 %v1864_v21, %v368_v55 }
  0x87   :  { %395 = vperm.xlu1 %1444, %v1722_v38  }
  0x8a   :  { %v360_v56 = vpop.permute.xlu1 %359  ;;  %v1807_v57 = vpop.permute.xlu0 %500 }
  0x8b   :  { %399 = vperm.xlu1 %1444, %v1674_v27   ;;  %v432_v42 = vmul.f32 %v1864_v21, %v360_v56  ;;  %v572_v45 = vmul.f32 %v1870_v23, %v1807_v57  ;;  %v573_v46 = vmul.f32 %v1873_v24, %v1807_v57 }
  0x8e   :  { %v1810_v58 = vpop.permute.xlu0 %512 }
  0x8f   :  { %1445 = vset.pattern.permute.xlu1 %v1525_v9  ;;  %v1813_v59 = vpop.permute.xlu1 %496 }
  0x90   :  { %540 = vperm.xlu1 %1445, %v1674_v27   ;;  %v288_v27 = vmul.f32 %v1843_v13, %v215_v52  ;;  %v571_v15 = vmul.f32 %v1873_v24, %v1813_v59 }
  0x92   :  { %v1816_v60 = vpop.permute.xlu0 %524 }
  0x94   :  { %1446 = vset.pattern.permute.xlu1 %v1526_v18  ;;  %v58_v61 = vpop.permute.xlu1 %57 }
  0x95   :  { %107 = vperm.xlu1 %1446, %v1767_v49   ;;  %v141_v38 = vmul.f32 %v1867_v22, %v58_v61  ;;  %v140_v52 = vmul.f32 %v1876_v25, %v58_v61 }
  0x97   :  { %v1820_v63 = vpop.permute.xlu0 %222 }
  0x98   :  { %v63_v2 = vpop.permute.xlu1 %62  ;;  %v293_v62 = vmul.f32 %v1846_v14, %v1820_v63 }
  0x99   :  { %1448 = vset.pattern.permute.xlu1 %v1524_v1  ;;  %v143_v30 = vmul.f32 %v1867_v22, %v63_v2  ;;  %v142_v47 = vmul.f32 %v1876_v25, %v63_v2 }
  0x9a   :  { %262 = vperm.xlu1 %1448, %v1767_v49  }
  0x9b   :  { %v1824_v4 = vpop.permute.xlu0 %234  ;;  %v186_v48 = vadd.f32 %v1884_v29, %v143_v30  ;;  %v185_v16 = vadd.f32 %v1879_v26, %v142_v47  ;;  %v292_v47 = vmul.f32 %v1843_v13, %v1820_v63 }
  0x9d   :  { %v227_v5 = vpop.permute.xlu1 %226 }
  0x9e   :  { %266 = vperm.xlu1 %1448, %v1735_v41   ;;  %v295_v39 = vmul.f32 %v1846_v14, %v227_v5  ;;  %v294_v57 = vmul.f32 %v1843_v13, %v227_v5 }
  0x9f   :  { %v1834_v10 = vpop.permute.xlu0 %246 }
  0xa0   :  { %v327_v2 = vadd.f32 %v295_v39, %v186_v48  ;;  %v183_v39 = vadd.f32 %v1879_v26, %v140_v52  ;;  %v326_v48 = vadd.f32 %v294_v57, %v185_v16 }
  0xa2   :  { %1450 = vset.pattern.permute.xlu1 %v1523_v0  ;;  %v1855_v17 = vpop.permute.xlu1 %363 }
  0xa3   :  { %407 = vperm.xlu1 %1450, %v1735_v41   ;;  %v1858_v19 = vpop.permute.xlu0 %258  ;;  %v431_v41 = vmul.f32 %v1861_v20, %v360_v56  ;;  %v184_v56 = vadd.f32 %v1884_v29, %v141_v38  ;;  %v434_v5 = vmul.f32 %v1864_v21, %v1855_v17  ;;  %v433_v57 = vmul.f32 %v1861_v20, %v1855_v17 }
  0xa7   :  { %1451 = vset.pattern.permute.xlu1 %v1525_v9  ;;  %v1892_v35 = vpop.permute.xlu1 %504 }
  0xa8   :  { %v48_v40 = vpop.permute.xlu0 %47  ;;  %544 = vperm.xlu1 %1451, %v1767_v49   ;;  %v570_v49 = vmul.f32 %v1870_v23, %v1813_v59  ;;  %v468_v59 = vadd.f32 %v436_v37, %v327_v2  ;;  %v324_v2 = vadd.f32 %v292_v47, %v183_v39 }
  0xa9   :  { %v136_v43 = vmul.f32 %v1876_v25, %v48_v40  ;;  %v137_v44 = vmul.f32 %v1867_v22, %v48_v40  ;;  %v325_v40 = vadd.f32 %v293_v62, %v184_v56 }
  0xab   :  { %v179_v53 = vadd.f32 %v1879_v26, %v136_v43  ;;  %v180_v54 = vadd.f32 %v1884_v29, %v137_v44  ;;  %v509_v55 = vpop.permute.xlu1 %508  ;;  %v575_v43 = vmul.f32 %v1873_v24, %v1892_v35 }
  0xac   :  { %v53_v3 = vpop.permute.xlu0 %52  ;;  %1452 = vset.pattern.permute.xlu1 %v1526_v18  ;;  %v577_v30 = vmul.f32 %v1873_v24, %v509_v55 }
  0xad   :  { %v320_v8 = vadd.f32 %v288_v27, %v179_v53  ;;  %v321_v11 = vadd.f32 %v289_v28, %v180_v54  ;;  %v138_v61 = vmul.f32 %v1876_v25, %v53_v3  ;;  %v139_v12 = vmul.f32 %v1867_v22, %v53_v3  ;;  %117 = vperm.xlu1 %1452, %v1781_v50  }
  0xae   :  { %v466_v3 = vadd.f32 %v434_v5, %v325_v40 }
  0xaf   :  { %v461_v38 = vadd.f32 %v429_v31, %v320_v8  ;;  %v181_v18 = vadd.f32 %v1879_v26, %v138_v61  ;;  %v182_v27 = vadd.f32 %v1884_v29, %v139_v12  ;;  %v462_v28 = vadd.f32 %v430_v32, %v321_v11 }
  0xb0   :  { %v73_v44 = vpop.permute.xlu1 %72  ;;  %v68_v31 = vpop.permute.xlu0 %67  ;;  %v609_v8 = vadd.f32 %v577_v30, %v468_v59  ;;  %v607_v62 = vadd.f32 %v575_v43, %v466_v3  ;;  %v467_v12 = vadd.f32 %v435_v36, %v326_v48  ;;  %v298_v48 = vmul.f32 %v1843_v13, %v1824_v4 }
  0xb1   :  { %v322_v53 = vadd.f32 %v290_v33, %v181_v18  ;;  %v323_v54 = vadd.f32 %v291_v34, %v182_v27  ;;  %122 = vperm.xlu1 %1452, %v1789_v51   ;;  %v603_v52 = vadd.f32 %v571_v15, %v462_v28  ;;  %v602_v56 = vadd.f32 %v570_v49, %v461_v38 }
  0xb2   :  { %v144_v61 = vmul.f32 %v1876_v25, %v68_v31  ;;  %v145_v37 = vmul.f32 %v1867_v22, %v68_v31  ;;  %v641_v49 = vmax.f32 %v609_v8, 0.0  ;;  %v639_v30 = vmax.f32 %v607_v62, 0.0 }
  0xb3   :  { %v463_v32 = vadd.f32 %v431_v41, %v322_v53  ;;  %v464_v11 = vadd.f32 %v432_v42, %v323_v54  ;;  %v574_v41 = vmul.f32 %v1870_v23, %v1892_v35  ;;  %v576_v42 = vmul.f32 %v1870_v23, %v509_v55 }
  0xb4   :  { %v635_v15 = vmax.f32 %v603_v52, 0.0  ;;  %v634_v5 = vmax.f32 %v602_v56, 0.0  ;;  %v465_v18 = vadd.f32 %v433_v57, %v324_v2  ;;  %v147_v28 = vmul.f32 %v1867_v22, %v73_v44 }
  0xb5   :  { %1454 = vset.pattern.permute.xlu1 %v1524_v1  ;;  %v231_v63 = vpop.permute.xlu1 %230  ;;  %v605_v33 = vadd.f32 %v573_v46, %v464_v11  ;;  %v604_v34 = vadd.f32 %v572_v45, %v463_v32  ;;  %v146_v1 = vmul.f32 %v1876_v25, %v73_v44  ;;  %v187_v45 = vadd.f32 %v1879_v26, %v144_v61 }
  0xb6   :  { %274 = vperm.xlu1 %1454, %v1789_v51   ;;  %v188_v46 = vadd.f32 %v1884_v29, %v145_v37  ;;  %v296_v17 = vmul.f32 %v1843_v13, %v231_v63  ;;  %v297_v35 = vmul.f32 %v1846_v14, %v231_v63  ;;  %v608_v27 = vadd.f32 %v576_v42, %v467_v12 }
  0xb7   :  { %v637_v16 = vmax.f32 %v605_v33, 0.0  ;;  %v636_v36 = vmax.f32 %v604_v34, 0.0  ;;  %v669_v59 = vpack.c.bf16 %v641_v49, %v639_v30  ;;  %v606_v47 = vadd.f32 %v574_v41, %v465_v18  ;;  %v1508_v18 = vld [vmem:[%s2252_s5] sm:$0xff]  }
  0xb8   :  { %v189_v53 = vadd.f32 %v1879_v26, %v146_v1  ;;  %v328_v54 = vadd.f32 %v296_v17, %v187_v45  ;;  %v329_v44 = vadd.f32 %v297_v35, %v188_v46  ;;  %v299_v31 = vmul.f32 %v1846_v14, %v1824_v4  ;;  %v83_v4 = vpop.permute.xlu0 %82 }
  0xb9   :  { %v667_v38 = vpack.c.bf16 %v637_v16, %v635_v15  ;;  %v666_v55 = vpack.c.bf16 %v636_v36, %v634_v5  ;;  %v640_v3 = vmax.f32 %v608_v27, 0.0  ;;  %v190_v8 = vadd.f32 %v1884_v29, %v147_v28 }
  0xba   :  { %1455 = vset.pattern.permute.xlu1 %v1523_v0  ;;  %v372_v39 = vpop.permute.xlu1 %371  ;;  %v578_v0 = vmul.f32 %v1870_v23, %v1810_v58  ;;  %v579_v11 = vmul.f32 %v1873_v24, %v1810_v58  ;;  %v638_v61 = vmax.f32 %v606_v47, 0.0  ;;  %v330_v2 = vadd.f32 %v298_v48, %v189_v53  ;;  %v1511_v48 = vld [vmem:[%s2252_s5 + $0x50] sm:$0xff]  }
  0xbb   :  { %v437_v40 = vmul.f32 %v1861_v20, %v372_v39  ;;  %v438_v43 = vmul.f32 %v1864_v21, %v372_v39  ;;  %411 = vperm.xlu1 %1455, %v1781_v50   ;;  %918 = vmatprep.mubr.bf16.mxu0 %v667_v38  ;;  %v331_v12 = vadd.f32 %v299_v31, %v190_v8  ;;  %v1509_v39 = vld [vmem:[%s2252_s5 + $0x48] sm:$0xff]  }
  0xbc   :  { %919 = vmatmul.mubr.bf16.vlgmr.msra.gmra.mrb[0].mxu0 %v666_v55  ;;  %v668_v63 = vpack.c.bf16 %v640_v3, %v638_v61  ;;  %v1972_v16 = vpop.permute.xlu0 %97  ;;  %v150_v38 = vmul.f32 %v1876_v25, %v83_v4  ;;  %v151_v55 = vmul.f32 %v1867_v22, %v83_v4 }
  0xbd   :  { %928 = vmatprep.mubr.bf16.mxu0 %v669_v59  ;;  %v469_v52 = vadd.f32 %v437_v40, %v328_v54  ;;  %v470_v56 = vadd.f32 %v438_v43, %v329_v44  ;;  %v1510_v43 = vld [vmem:[%s2252_s5 + $0x8] sm:$0xff]  }
  0xbe   :  { %v376_v32 = vpop.permute.xlu1 %375  ;;  %v193_v53 = vadd.f32 %v1879_v26, %v150_v38  ;;  %v194_v54 = vadd.f32 %v1884_v29, %v151_v55 }
  0xbf   :  { %v439_v62 = vmul.f32 %v1861_v20, %v376_v32  ;;  %1457 = vset.pattern.permute.xlu1 %v1525_v9  ;;  %v440_v37 = vmul.f32 %v1864_v21, %v376_v32  ;;  %v610_v33 = vadd.f32 %v578_v0, %v469_v52  ;;  %v611_v34 = vadd.f32 %v579_v11, %v470_v56  ;;  %v1512_v32 = vld [vmem:[%s2252_s5 + $0x10] sm:$0xff]  }
  0xc0   :  { %552 = vperm.xlu1 %1457, %v1781_v50   ;;  %v1974_v17 = vpop.permute.xlu0 %112 }
  0xc1   :  { %v471_v57 = vadd.f32 %v439_v62, %v330_v2  ;;  %v472_v58 = vadd.f32 %v440_v37, %v331_v12  ;;  %v643_v30 = vmax.f32 %v611_v34, 0.0  ;;  %v642_v1 = vmax.f32 %v610_v33, 0.0  ;;  %v1513_v37 = vld [vmem:[%s2252_s5 + $0x58] sm:$0xff]  }
  0xc2   :  { %v584_v33 = vmul.f32 %v1870_v23, %v1816_v60  ;;  %v585_v34 = vmul.f32 %v1873_v24, %v1816_v60 }
  0xc3   :  { %v517_v41 = vpop.permute.xlu1 %516 }
  0xc4   :  { %v580_v42 = vmul.f32 %v1870_v23, %v517_v41  ;;  %v581_v49 = vmul.f32 %v1873_v24, %v517_v41  ;;  %556 = vperm.xlu1 %1457, %v1789_v51   ;;  %929 = vmatmul.mubr.bf16.gmra.mrb[4].mxu0 %v668_v63  ;;  %v1507_v51 = vld [vmem:[%s2252_s5 + $0x40] sm:$0xff]   ;;  %v380_v44 = vpop.permute.xlu0 %379 }
  0xc5   :  { %1351 = vmatprep.subr.bf16.mxu1 %v1507_v51  ;;  %v441_v56 = vmul.f32 %v1861_v20, %v380_v44  ;;  %v442_v62 = vmul.f32 %v1864_v21, %v380_v44 }
  0xc6   :  { %v612_v9 = vadd.f32 %v580_v42, %v471_v57  ;;  %v613_v15 = vadd.f32 %v581_v49, %v472_v58  ;;  %1352 = vmatpush3.bf16.msra.mxu1 %v1508_v18  ;;  %v1514_v57 = vld [vmem:[%s2252_s5 + $0x18] sm:$0xff]   ;;  %v1515_v42 = vld [vmem:[%s2252_s5 + $0x60] sm:$0xff]  }
  0xc7   :  { %1353 = vmatprep.subr.bf16.mxu1 %v1509_v39 }
  0xc8   :  { %v644_v50 = vmax.f32 %v612_v9, 0.0  ;;  %v645_v5 = vmax.f32 %v613_v15, 0.0  ;;  %v78_v36 = vpop.permute.xlu1 %77 }
  0xc9   :  { %v148_v27 = vmul.f32 %v1876_v25, %v78_v36  ;;  %v149_v28 = vmul.f32 %v1867_v22, %v78_v36 }
  0xca   :  { %v671_v45 = vpack.c.bf16 %v645_v5, %v643_v30  ;;  %v670_v46 = vpack.c.bf16 %v644_v50, %v642_v1  ;;  %1354 = vmatpush3.bf16.msra.mxu1 %v1510_v43  ;;  %v1516_v30 = vld [vmem:[%s2252_s5 + $0x20] sm:$0xff]  }
  0xcb   :  { %v191_v3 = vadd.f32 %v1879_v26, %v148_v27  ;;  %v192_v8 = vadd.f32 %v1884_v29, %v149_v28  ;;  %1355 = vmatprep.subr.bf16.mxu1 %v1511_v48 }
  0xcc   :  { %938 = vmatprep.mubr.bf16.mxu0 %v671_v45 }
  0xcd   :  { %939 = vmatmul.mubr.bf16.gmra.mrb[8].mxu0 %v670_v46  ;;  %v239_v35 = vpop.permute.xlu1 %238  ;;  %v1517_v46 = vld [vmem:[%s2252_s5 + $0x68] sm:$0xff]  }
  0xce   :  { %v300_v59 = vmul.f32 %v1843_v13, %v239_v35  ;;  %v301_v47 = vmul.f32 %v1846_v14, %v239_v35  ;;  %1356 = vmatpush3.bf16.msra.mxu1 %v1512_v32  ;;  %v392_v32 = vpop.permute.xlu0 %391 }
  0xcf   :  { %1357 = vmatprep.subr.bf16.mxu1 %v1513_v37 }
  0xd0   :  { %v332_v11 = vadd.f32 %v300_v59, %v191_v3  ;;  %v333_v52 = vadd.f32 %v301_v47, %v192_v8 }
  0xd1   :  { %v243_v40 = vpop.permute.xlu1 %242 }
  0xd2   :  { %v302_v0 = vmul.f32 %v1843_v13, %v243_v40  ;;  %v303_v31 = vmul.f32 %v1846_v14, %v243_v40  ;;  %v473_v49 = vadd.f32 %v441_v56, %v332_v11  ;;  %v474_v9 = vadd.f32 %v442_v62, %v333_v52  ;;  %1358 = vmatpush3.bf16.msra.mxu1 %v1514_v57 }
  0xd3   :  { %1359 = vmatprep.subr.bf16.mxu1 %v1515_v42 }
  0xd4   :  { %v334_v2 = vadd.f32 %v302_v0, %v193_v53  ;;  %v335_v4 = vadd.f32 %v303_v31, %v194_v54  ;;  %v304_v0 = vmul.f32 %v1843_v13, %v1834_v10  ;;  %v305_v31 = vmul.f32 %v1846_v14, %v1834_v10 }
  0xd6   :  { %v384_v61 = vpop.permute.xlu1 %383  ;;  %1360 = vmatpush3.bf16.msra.mxu1 %v1516_v30 }
  0xd7   :  { %v443_v12 = vmul.f32 %v1861_v20, %v384_v61  ;;  %v444_v63 = vmul.f32 %v1864_v21, %v384_v61  ;;  %1361 = vmatprep.subr.bf16.mxu1 %v1517_v46 }
  0xd9   :  { %v475_v41 = vadd.f32 %v443_v12, %v334_v2  ;;  %v476_v58 = vadd.f32 %v444_v63, %v335_v4  ;;  %v447_v2 = vmul.f32 %v1861_v20, %v392_v32  ;;  %v448_v4 = vmul.f32 %v1864_v21, %v392_v32 }
  0xdb   :  { %v521_v15 = vpop.permute.xlu1 %520  ;;  %v616_v50 = vadd.f32 %v584_v33, %v475_v41  ;;  %v617_v5 = vadd.f32 %v585_v34, %v476_v58 }
  0xdc   :  { %v582_v36 = vmul.f32 %v1870_v23, %v521_v15  ;;  %v583_v60 = vmul.f32 %v1873_v24, %v521_v15 }
  0xdd   :  { %v649_v55 = vmax.f32 %v617_v5, 0.0  ;;  %v648_v18 = vmax.f32 %v616_v50, 0.0 }
  0xde   :  { %v614_v1 = vadd.f32 %v582_v36, %v473_v49  ;;  %v615_v45 = vadd.f32 %v583_v60, %v474_v9 }
  0xe0   :  { %v646_v35 = vmax.f32 %v614_v1, 0.0  ;;  %v647_v51 = vmax.f32 %v615_v45, 0.0  ;;  %v88_v38 = vpop.permute.xlu1 %87 }
  0xe1   :  { %v152_v43 = vmul.f32 %v1876_v25, %v88_v38  ;;  %v153_v59 = vmul.f32 %v1867_v22, %v88_v38 }
  0xe2   :  { %v673_v27 = vpack.c.bf16 %v649_v55, %v647_v51  ;;  %v672_v28 = vpack.c.bf16 %v648_v18, %v646_v35  ;;  %v156_v55 = vmul.f32 %v1876_v25, %v1972_v16  ;;  %v157_v18 = vmul.f32 %v1867_v22, %v1972_v16 }
  0xe3   :  { %v195_v3 = vadd.f32 %v1879_v26, %v152_v43  ;;  %v196_v8 = vadd.f32 %v1884_v29, %v153_v59 }
  0xe4   :  { %948 = vmatprep.mubr.bf16.mxu0 %v673_v27  ;;  %v93_v39 = vpop.permute.xlu1 %92 }
  0xe5   :  { %949 = vmatmul.mubr.bf16.gmra.mrb[12].mxu0 %v672_v28  ;;  %v154_v47 = vmul.f32 %v1876_v25, %v93_v39  ;;  %v155_v48 = vmul.f32 %v1867_v22, %v93_v39  ;;  %v336_v12 = vadd.f32 %v304_v0, %v195_v3  ;;  %v337_v63 = vadd.f32 %v305_v31, %v196_v8  ;;  %v2057_v28 = vpop.permute.xlu0 %403 }
  0xe6   :  { %v199_v39 = vadd.f32 %v1879_v26, %v156_v55 }
  0xe7   :  { %v197_v11 = vadd.f32 %v1879_v26, %v154_v47  ;;  %v198_v52 = vadd.f32 %v1884_v29, %v155_v48 }
  0xe9   :  { %v251_v40 = vpop.permute.xlu1 %250 }
  0xea   :  { %v306_v54 = vmul.f32 %v1843_v13, %v251_v40  ;;  %v307_v44 = vmul.f32 %v1846_v14, %v251_v40  ;;  %v200_v40 = vadd.f32 %v1884_v29, %v157_v18 }
  0xec   :  { %v338_v61 = vadd.f32 %v306_v54, %v197_v11  ;;  %v339_v37 = vadd.f32 %v307_v44, %v198_v52  ;;  %v537_v44 = vpop.permute.xlu0 %536 }
  0xee   :  { %v388_v53 = vpop.permute.xlu1 %387  ;;  %v479_v58 = vadd.f32 %v447_v2, %v338_v61  ;;  %v480_v42 = vadd.f32 %v448_v4, %v339_v37  ;;  %v310_v61 = vmul.f32 %v1843_v13, %v1858_v19  ;;  %v311_v37 = vmul.f32 %v1846_v14, %v1858_v19  ;;  %v1518_v19 = vld [vmem:[%s2252_s5 + $0x28] sm:$0xff]  }
  0xef   :  { %v445_v56 = vmul.f32 %v1861_v20, %v388_v53  ;;  %v446_v62 = vmul.f32 %v1864_v21, %v388_v53  ;;  %1362 = vmatpush3.bf16.msra.mxu1 %v1518_v19 }
  0xf1   :  { %v477_v57 = vadd.f32 %v445_v56, %v336_v12  ;;  %v478_v41 = vadd.f32 %v446_v62, %v337_v63  ;;  %v590_v56 = vmul.f32 %v1870_v23, %v537_v44  ;;  %v591_v62 = vmul.f32 %v1873_v24, %v537_v44 }
  0xf3   :  { %v529_v10 = vpop.permute.xlu1 %528 }
  0xf4   :  { %v586_v33 = vmul.f32 %v1870_v23, %v529_v10  ;;  %v587_v34 = vmul.f32 %v1873_v24, %v529_v10 }
  0xf6   :  { %v618_v9 = vadd.f32 %v586_v33, %v477_v57  ;;  %v619_v15 = vadd.f32 %v587_v34, %v478_v41 }
  0xf7   :  { %v533_v49 = vpop.permute.xlu1 %532 }
  0xf8   :  { %v588_v50 = vmul.f32 %v1870_v23, %v533_v49  ;;  %v589_v5 = vmul.f32 %v1873_v24, %v533_v49  ;;  %v650_v30 = vmax.f32 %v618_v9, 0.0  ;;  %v651_v1 = vmax.f32 %v619_v15, 0.0 }
  0xfa   :  { %v620_v36 = vadd.f32 %v588_v50, %v479_v58  ;;  %v621_v60 = vadd.f32 %v589_v5, %v480_v42 }
  0xfc   :  { %v652_v45 = vmax.f32 %v620_v36, 0.0  ;;  %v653_v46 = vmax.f32 %v621_v60, 0.0  ;;  %v103_v35 = vpop.permute.xlu1 %102 }
  0xfd   :  { %v158_v47 = vmul.f32 %v1876_v25, %v103_v35  ;;  %v159_v48 = vmul.f32 %v1867_v22, %v103_v35  ;;  %v1521_v35 = vld [vmem:[%s2252_s5 + $0x78] sm:$0xff]  }
  0xfe   :  { %v675_v51 = vpack.c.bf16 %v653_v46, %v651_v1  ;;  %v674_v38 = vpack.c.bf16 %v652_v45, %v650_v30  ;;  %v1519_v30 = vld [vmem:[%s2252_s5 + $0x70] sm:$0xff]  }
  0xff   :  { %v201_v3 = vadd.f32 %v1879_v26, %v158_v47  ;;  %v202_v8 = vadd.f32 %v1884_v29, %v159_v48  ;;  %v1520_v46 = vld [vmem:[%s2252_s5 + $0x30] sm:$0xff]   ;;  %1363 = vmatprep.subr.bf16.mxu1 %v1519_v30 }
 0x100   :  { %958 = vmatprep.mubr.bf16.mxu0 %v675_v51  ;;  %1364 = vmatpush3.bf16.msra.mxu1 %v1520_v46 }
 0x101   :  { %959 = vmatmul.mubr.bf16.gmra.mrb[16].mxu0 %v674_v38  ;;  %v255_v27 = vpop.permute.xlu1 %254  ;;  %v342_v10 = vadd.f32 %v310_v61, %v201_v3  ;;  %v343_v12 = vadd.f32 %v311_v37, %v202_v8  ;;  %1365 = vmatprep.subr.bf16.mxu1 %v1521_v35  ;;  %v1522_v38 = vld [vmem:[%s2252_s5 + $0x38] sm:$0xff]  }
 0x102   :  { %v308_v43 = vmul.f32 %v1843_v13, %v255_v27  ;;  %v309_v59 = vmul.f32 %v1846_v14, %v255_v27  ;;  %v162_v27 = vmul.f32 %v1876_v25, %v1974_v17 }
 0x104   :  { %v340_v0 = vadd.f32 %v308_v43, %v199_v39  ;;  %v341_v31 = vadd.f32 %v309_v59, %v200_v40  ;;  %1366 = vmatpush3.bf16.msra.mxu1 %v1522_v38  ;;  %v163_v39 = vmul.f32 %v1867_v22, %v1974_v17  ;;  %v453_v17 = vmul.f32 %v1861_v20, %v2057_v28 }
 0x106   :  { %v396_v53 = vpop.permute.xlu1 %395  ;;  %v206_v44 = vadd.f32 %v1884_v29, %v163_v39 }
 0x107   :  { %v449_v54 = vmul.f32 %v1861_v20, %v396_v53  ;;  %v450_v16 = vmul.f32 %v1864_v21, %v396_v53 }
 0x109   :  { %v481_v11 = vadd.f32 %v449_v54, %v340_v0  ;;  %v482_v52 = vadd.f32 %v450_v16, %v341_v31  ;;  %v205_v16 = vadd.f32 %v1879_v26, %v162_v27  ;;  %v549_v0 = vpop.permute.xlu0 %548  ;;  %v454_v31 = vmul.f32 %v1864_v21, %v2057_v28 }
 0x10a   :  { %v400_v32 = vpop.permute.xlu1 %399  ;;  %v596_v61 = vmul.f32 %v1870_v23, %v549_v0  ;;  %v597_v37 = vmul.f32 %v1873_v24, %v549_v0 }
 0x10b   :  { %v451_v2 = vmul.f32 %v1861_v20, %v400_v32  ;;  %v452_v4 = vmul.f32 %v1864_v21, %v400_v32  ;;  %v622_v63 = vadd.f32 %v590_v56, %v481_v11  ;;  %v623_v33 = vadd.f32 %v591_v62, %v482_v52 }
 0x10d   :  { %v483_v57 = vadd.f32 %v451_v2, %v342_v10  ;;  %v484_v41 = vadd.f32 %v452_v4, %v343_v12  ;;  %v654_v15 = vmax.f32 %v622_v63, 0.0  ;;  %v655_v50 = vmax.f32 %v623_v33, 0.0 }
 0x10f   :  { %v541_v34 = vpop.permute.xlu1 %540 }
 0x110   :  { %v592_v58 = vmul.f32 %v1870_v23, %v541_v34  ;;  %v593_v42 = vmul.f32 %v1873_v24, %v541_v34 }
 0x112   :  { %v624_v49 = vadd.f32 %v592_v58, %v483_v57  ;;  %v625_v9 = vadd.f32 %v593_v42, %v484_v41 }
 0x114   :  { %v656_v5 = vmax.f32 %v624_v49, 0.0  ;;  %v657_v36 = vmax.f32 %v625_v9, 0.0  ;;  %v108_v60 = vpop.permute.xlu1 %107 }
 0x115   :  { %v160_v55 = vmul.f32 %v1876_v25, %v108_v60  ;;  %v161_v18 = vmul.f32 %v1867_v22, %v108_v60 }
 0x116   :  { %v677_v1 = vpack.c.bf16 %v657_v36, %v655_v50  ;;  %v676_v45 = vpack.c.bf16 %v656_v5, %v654_v15 }
 0x117   :  { %v203_v53 = vadd.f32 %v1879_v26, %v160_v55  ;;  %v204_v54 = vadd.f32 %v1884_v29, %v161_v18 }
 0x118   :  { %968 = vmatprep.mubr.bf16.mxu0 %v677_v1 }
 0x119   :  { %969 = vmatmul.mubr.bf16.gmra.mrb[20].mxu0 %v676_v45  ;;  %v263_v51 = vpop.permute.xlu1 %262  ;;  %v271_v45 = vpop.permute.xlu0 %270 }
 0x11a   :  { %v312_v43 = vmul.f32 %v1843_v13, %v263_v51  ;;  %v313_v59 = vmul.f32 %v1846_v14, %v263_v51  ;;  %v316_v39 = vmul.f32 %v1843_v13, %v271_v45 }
 0x11c   :  { %v344_v3 = vadd.f32 %v312_v43, %v203_v53  ;;  %v345_v8 = vadd.f32 %v313_v59, %v204_v54 }
 0x11d   :  { %v267_v40 = vpop.permute.xlu1 %266  ;;  %v416_v43 = vpop.permute.xlu0 %415 }
 0x11e   :  { %v314_v47 = vmul.f32 %v1843_v13, %v267_v40  ;;  %v315_v48 = vmul.f32 %v1846_v14, %v267_v40  ;;  %v485_v10 = vadd.f32 %v453_v17, %v344_v3  ;;  %v486_v12 = vadd.f32 %v454_v31, %v345_v8 }
 0x11f   :  { %v317_v40 = vmul.f32 %v1846_v14, %v271_v45  ;;  %v459_v54 = vmul.f32 %v1861_v20, %v416_v43 }
 0x120   :  { %v346_v11 = vadd.f32 %v314_v47, %v205_v16  ;;  %v347_v52 = vadd.f32 %v315_v48, %v206_v44  ;;  %v460_v16 = vmul.f32 %v1864_v21, %v416_v43 }
 0x122   :  { %v408_v32 = vpop.permute.xlu1 %407 }
 0x123   :  { %v455_v56 = vmul.f32 %v1861_v20, %v408_v32  ;;  %v456_v62 = vmul.f32 %v1864_v21, %v408_v32 }
 0x125   :  { %v487_v2 = vadd.f32 %v455_v56, %v346_v11  ;;  %v488_v4 = vadd.f32 %v456_v62, %v347_v52 }
 0x127   :  { %v545_v63 = vpop.permute.xlu1 %544  ;;  %v628_v33 = vadd.f32 %v596_v61, %v487_v2  ;;  %v629_v28 = vadd.f32 %v597_v37, %v488_v4 }
 0x128   :  { %v594_v34 = vmul.f32 %v1870_v23, %v545_v63  ;;  %v595_v57 = vmul.f32 %v1873_v24, %v545_v63 }
 0x129   :  { %v660_v42 = vmax.f32 %v628_v33, 0.0  ;;  %v661_v49 = vmax.f32 %v629_v28, 0.0 }
 0x12a   :  { %v626_v41 = vadd.f32 %v594_v34, %v485_v10  ;;  %v627_v58 = vadd.f32 %v595_v57, %v486_v12  ;;  %v714_v12 = vld [vmem:[%s2253_s4] sm:$0x3] }
 0x12b   :  { %v2142_v63 = vrot.slane %v714_v12, %v1826_v6 }
 0x12c   :  { %v658_v9 = vmax.f32 %v626_v41, 0.0  ;;  %v659_v19 = vmax.f32 %v627_v58, 0.0  ;;  %v118_v15 = vpop.permute.xlu1 %117 }
 0x12d   :  { %v164_v30 = vmul.f32 %v1876_v25, %v118_v15  ;;  %v165_v1 = vmul.f32 %v1867_v22, %v118_v15 }
 0x12e   :  { %v679_v50 = vpack.c.bf16 %v661_v49, %v659_v19  ;;  %v678_v5 = vpack.c.bf16 %v660_v42, %v658_v9 }
 0x12f   :  { %v207_v18 = vadd.f32 %v1879_v26, %v164_v30  ;;  %v208_v27 = vadd.f32 %v1884_v29, %v165_v1 }
 0x130   :  { %978 = vmatprep.mubr.bf16.mxu0 %v679_v50  ;;  %v123_v36 = vpop.permute.xlu1 %122 }
 0x131   :  { %979 = vmatmul.mubr.bf16.gmra.mrb[24].mxu0 %v678_v5  ;;  %v166_v46 = vmul.f32 %v1876_v25, %v123_v36  ;;  %v167_v35 = vmul.f32 %v1867_v22, %v123_v36  ;;  %v348_v0 = vadd.f32 %v316_v39, %v207_v18 }
 0x133   :  { %v209_v59 = vadd.f32 %v1879_v26, %v166_v46  ;;  %v210_v25 = vadd.f32 %v1884_v29, %v167_v35 }
 0x135   :  { %v275_v60 = vpop.permute.xlu1 %274 }
 0x136   :  { %v318_v38 = vmul.f32 %v1843_v13, %v275_v60  ;;  %v319_v55 = vmul.f32 %v1846_v14, %v275_v60  ;;  %v349_v13 = vadd.f32 %v317_v40, %v208_v27 }
 0x138   :  { %v350_v48 = vadd.f32 %v318_v38, %v209_v59  ;;  %v351_v53 = vadd.f32 %v319_v55, %v210_v25 }
 0x13a   :  { %v412_v51 = vpop.permute.xlu1 %411  ;;  %v491_v29 = vadd.f32 %v459_v54, %v350_v48  ;;  %v492_v3 = vadd.f32 %v460_v16, %v351_v53 }
 0x13b   :  { %v457_v22 = vmul.f32 %v1861_v20, %v412_v51  ;;  %v458_v47 = vmul.f32 %v1864_v21, %v412_v51 }
 0x13d   :  { %v489_v26 = vadd.f32 %v457_v22, %v348_v0  ;;  %v490_v31 = vadd.f32 %v458_v47, %v349_v13 }
 0x13f   :  { %v553_v44 = vpop.permute.xlu1 %552 }
 0x140   :  { %v598_v14 = vmul.f32 %v1870_v23, %v553_v44  ;;  %v599_v17 = vmul.f32 %v1873_v24, %v553_v44 }
 0x142   :  { %v630_v32 = vadd.f32 %v598_v14, %v489_v26  ;;  %v631_v11 = vadd.f32 %v599_v17, %v490_v31 }
 0x143   :  { %v557_v8 = vpop.permute.xlu1 %556 }
 0x144   :  { %v600_v52 = vmul.f32 %v1870_v23, %v557_v8  ;;  %v601_v20 = vmul.f32 %v1873_v24, %v557_v8  ;;  %v662_v62 = vmax.f32 %v630_v32, 0.0  ;;  %v663_v61 = vmax.f32 %v631_v11, 0.0 }
 0x145   :  { %v2145_v23 = vrot.slane %v714_v12, %v1828_v7 }
 0x146   :  { %v632_v56 = vadd.f32 %v600_v52, %v491_v29  ;;  %v633_v21 = vadd.f32 %v601_v20, %v492_v3 }
 0x148   :  { %v664_v37 = vmax.f32 %v632_v56, 0.0  ;;  %v665_v2 = vmax.f32 %v633_v21, 0.0 }
 0x14a   :  { %v681_v4 = vpack.c.bf16 %v665_v2, %v663_v61  ;;  %v680_v10 = vpack.c.bf16 %v664_v37, %v662_v62 }
 0x14c   :  { %988 = vmatprep.mubr.bf16.mxu0 %v681_v4 }
 0x14d   :  { %989 = vmatmul.mubr.bf16.gmra.mrb[28].mxu0 %v680_v10 }
 0x18f   :  { %v920_v24 = vpop.f32.mrb[0].mxu0 }
 0x190   :  { %v921_v33 = vadd.f32 %v920_v24, %v2142_v63  ;;  %v922_v28 = vpop.f32.mrb[1].mxu0 }
 0x191   :  { %v923_v34 = vadd.f32 %v922_v28, %v2145_v23  ;;  %v924_v57 = vpop.f32.mrb[2].mxu0 }
 0x192   :  { %v925_v41 = vadd.f32 %v924_v57, %v2142_v63  ;;  %v926_v58 = vpop.f32.mrb[3].mxu0  ;;  %v999_v49 = vmax.f32 %v921_v33, 0.0 }
 0x193   :  { %v927_v42 = vadd.f32 %v926_v58, %v2145_v23  ;;  %v1000_v19 = vmax.f32 %v923_v34, 0.0 }
 0x194   :  { %v1001_v9 = vmax.f32 %v925_v41, 0.0 }
 0x195   :  { %v1002_v6 = vmax.f32 %v927_v42, 0.0 }
 0x196   :  { %v1031_v15 = vpack.c.bf16 %v1001_v9, %v999_v49 }
 0x197   :  { %v930_v50 = vpop.f32.mrb[4].mxu0  ;;  %v1032_v7 = vpack.c.bf16 %v1002_v6, %v1000_v19 }
 0x198   :  { %v931_v5 = vadd.f32 %v930_v50, %v2142_v63  ;;  %v932_v36 = vpop.f32.mrb[5].mxu0 }
 0x199   :  { %v933_v60 = vadd.f32 %v932_v36, %v2145_v23  ;;  %v934_v30 = vpop.f32.mrb[6].mxu0  ;;  %1214 = vmatprep.mubr.bf16.mxu1 %v1032_v7 }
 0x19a   :  { %v935_v1 = vadd.f32 %v934_v30, %v2142_v63  ;;  %v936_v45 = vpop.f32.mrb[7].mxu0  ;;  %1215 = vmatmul.mubr.bf16.vlgmr.msra.gmra.mrb[0].mxu1 %v1031_v15  ;;  %v1003_v35 = vmax.f32 %v931_v5, 0.0 }
 0x19b   :  { %v937_v46 = vadd.f32 %v936_v45, %v2145_v23  ;;  %v1004_v38 = vmax.f32 %v933_v60, 0.0 }
 0x19c   :  { %v1005_v51 = vmax.f32 %v935_v1, 0.0 }
 0x19d   :  { %v1006_v55 = vmax.f32 %v937_v46, 0.0 }
 0x19e   :  { %v1033_v18 = vpack.c.bf16 %v1005_v51, %v1003_v35 }
 0x19f   :  { %v1034_v27 = vpack.c.bf16 %v1006_v55, %v1004_v38 }
 0x1a0   :  { %v940_v39 = vpop.f32.mrb[8].mxu0 }
 0x1a1   :  { %v941_v40 = vadd.f32 %v940_v39, %v2142_v63  ;;  %v942_v43 = vpop.f32.mrb[9].mxu0  ;;  %1222 = vmatprep.mubr.bf16.mxu1 %v1034_v27 }
 0x1a2   :  { %v943_v59 = vadd.f32 %v942_v43, %v2145_v23  ;;  %v944_v25 = vpop.f32.mrb[10].mxu0  ;;  %1223 = vmatmul.mubr.bf16.gmra.mrb[4].mxu1 %v1033_v18 }
 0x1a3   :  { %v945_v22 = vadd.f32 %v944_v25, %v2142_v63  ;;  %v946_v47 = vpop.f32.mrb[11].mxu0  ;;  %v1007_v53 = vmax.f32 %v941_v40, 0.0 }
 0x1a4   :  { %v947_v48 = vadd.f32 %v946_v47, %v2145_v23  ;;  %v1008_v16 = vmax.f32 %v943_v59, 0.0 }
 0x1a5   :  { %v1009_v54 = vmax.f32 %v945_v22, 0.0 }
 0x1a6   :  { %v1010_v44 = vmax.f32 %v947_v48, 0.0 }
 0x1a7   :  { %v1035_v0 = vpack.c.bf16 %v1009_v54, %v1007_v53 }
 0x1a8   :  { %v1036_v13 = vpack.c.bf16 %v1010_v44, %v1008_v16 }
 0x1aa   :  { %1230 = vmatprep.mubr.bf16.mxu1 %v1036_v13 }
 0x1ab   :  { %1231 = vmatmul.mubr.bf16.gmra.mrb[8].mxu1 %v1035_v0 }
 0x1b8   :  { %v950_v14 = vpop.f32.mrb[12].mxu0 }
 0x1b9   :  { %v951_v17 = vadd.f32 %v950_v14, %v2142_v63  ;;  %v952_v26 = vpop.f32.mrb[13].mxu0 }
 0x1ba   :  { %v953_v31 = vadd.f32 %v952_v26, %v2145_v23  ;;  %v954_v29 = vpop.f32.mrb[14].mxu0 }
 0x1bb   :  { %v955_v3 = vadd.f32 %v954_v29, %v2142_v63  ;;  %v956_v8 = vpop.f32.mrb[15].mxu0  ;;  %v1011_v11 = vmax.f32 %v951_v17, 0.0 }
 0x1bc   :  { %v957_v32 = vadd.f32 %v956_v8, %v2145_v23  ;;  %v1012_v20 = vmax.f32 %v953_v31, 0.0 }
 0x1bd   :  { %v1013_v52 = vmax.f32 %v955_v3, 0.0 }
 0x1be   :  { %v1014_v56 = vmax.f32 %v957_v32, 0.0 }
 0x1bf   :  { %v1037_v21 = vpack.c.bf16 %v1013_v52, %v1011_v11  ;;  %v2182_v52 = vld [vmem:[%s2254_s6] ss:$0 sm:$0xff] }
 0x1c0   :  { %v1038_v62 = vpack.c.bf16 %v1014_v56, %v1012_v20 }
 0x1c2   :  { %1238 = vmatprep.mubr.bf16.mxu1 %v1038_v62 }
 0x1c3   :  { %1239 = vmatmul.mubr.bf16.gmra.mrb[12].mxu1 %v1037_v21 }
 0x1d4   :  { %v960_v61 = vpop.f32.mrb[16].mxu0 }
 0x1d5   :  { %v961_v37 = vadd.f32 %v960_v61, %v2142_v63  ;;  %v962_v2 = vpop.f32.mrb[17].mxu0 }
 0x1d6   :  { %v963_v4 = vadd.f32 %v962_v2, %v2145_v23  ;;  %v964_v10 = vpop.f32.mrb[18].mxu0 }
 0x1d7   :  { %v965_v12 = vadd.f32 %v964_v10, %v2142_v63  ;;  %v966_v24 = vpop.f32.mrb[19].mxu0  ;;  %v1015_v28 = vmax.f32 %v961_v37, 0.0 }
 0x1d8   :  { %v967_v33 = vadd.f32 %v966_v24, %v2145_v23  ;;  %v1016_v57 = vmax.f32 %v963_v4, 0.0 }
 0x1d9   :  { %v1017_v34 = vmax.f32 %v965_v12, 0.0 }
 0x1da   :  { %v1018_v41 = vmax.f32 %v967_v33, 0.0 }
 0x1db   :  { %v1039_v58 = vpack.c.bf16 %v1017_v34, %v1015_v28 }
 0x1dc   :  { %v1040_v42 = vpack.c.bf16 %v1018_v41, %v1016_v57 }
 0x1de   :  { %1246 = vmatprep.mubr.bf16.mxu1 %v1040_v42 }
 0x1df   :  { %1247 = vmatmul.mubr.bf16.gmra.mrb[16].mxu1 %v1039_v58 }
 0x1ec   :  { %v970_v49 = vpop.f32.mrb[20].mxu0 }
 0x1ed   :  { %v971_v9 = vadd.f32 %v970_v49, %v2142_v63  ;;  %v972_v19 = vpop.f32.mrb[21].mxu0 }
 0x1ee   :  { %v973_v6 = vadd.f32 %v972_v19, %v2145_v23  ;;  %v974_v15 = vpop.f32.mrb[22].mxu0 }
 0x1ef   :  { %v975_v50 = vadd.f32 %v974_v15, %v2142_v63  ;;  %v976_v7 = vpop.f32.mrb[23].mxu0  ;;  %v1019_v36 = vmax.f32 %v971_v9, 0.0 }
 0x1f0   :  { %v977_v5 = vadd.f32 %v976_v7, %v2145_v23  ;;  %v1020_v30 = vmax.f32 %v973_v6, 0.0 }
 0x1f1   :  { %v1021_v60 = vmax.f32 %v975_v50, 0.0 }
 0x1f2   :  { %v1022_v1 = vmax.f32 %v977_v5, 0.0 }
 0x1f3   :  { %v1041_v45 = vpack.c.bf16 %v1021_v60, %v1019_v36 }
 0x1f4   :  { %v1042_v46 = vpack.c.bf16 %v1022_v1, %v1020_v30 }
 0x1f6   :  { %1254 = vmatprep.mubr.bf16.mxu1 %v1042_v46 }
 0x1f7   :  { %1255 = vmatmul.mubr.bf16.gmra.mrb[20].mxu1 %v1041_v45 }
 0x204   :  { %v980_v35 = vpop.f32.mrb[24].mxu0 }
 0x205   :  { %v981_v51 = vadd.f32 %v980_v35, %v2142_v63  ;;  %v982_v38 = vpop.f32.mrb[25].mxu0 }
 0x206   :  { %v983_v55 = vadd.f32 %v982_v38, %v2145_v23  ;;  %v984_v18 = vpop.f32.mrb[26].mxu0 }
 0x207   :  { %v985_v27 = vadd.f32 %v984_v18, %v2142_v63  ;;  %v986_v39 = vpop.f32.mrb[27].mxu0  ;;  %v1023_v43 = vmax.f32 %v981_v51, 0.0 }
 0x208   :  { %v987_v40 = vadd.f32 %v986_v39, %v2145_v23  ;;  %v1024_v25 = vmax.f32 %v983_v55, 0.0 }
 0x209   :  { %v1025_v59 = vmax.f32 %v985_v27, 0.0 }
 0x20a   :  { %v1026_v22 = vmax.f32 %v987_v40, 0.0 }
 0x20b   :  { %v1043_v47 = vpack.c.bf16 %v1025_v59, %v1023_v43 }
 0x20c   :  { %v1044_v48 = vpack.c.bf16 %v1026_v22, %v1024_v25 }
 0x20e   :  { %1262 = vmatprep.mubr.bf16.mxu1 %v1044_v48 }
 0x20f   :  { %1263 = vmatmul.mubr.bf16.gmra.mrb[24].mxu1 %v1043_v47 }
 0x220   :  { %v990_v53 = vpop.f32.mrb[28].mxu0 }
 0x221   :  { %v991_v54 = vadd.f32 %v990_v53, %v2142_v63  ;;  %v992_v16 = vpop.f32.mrb[29].mxu0 }
 0x222   :  { %v993_v44 = vadd.f32 %v992_v16, %v2145_v23  ;;  %v994_v0 = vpop.f32.mrb[30].mxu0 }
 0x223   :  { %v995_v13 = vadd.f32 %v994_v0, %v2142_v63  ;;  %v996_v14 = vpop.f32.mrb[31].mxu0  ;;  %v1027_v26 = vmax.f32 %v991_v54, 0.0 }
 0x224   :  { %v997_v17 = vadd.f32 %v996_v14, %v2145_v23  ;;  %v1028_v29 = vmax.f32 %v993_v44, 0.0 }
 0x225   :  { %v1029_v31 = vmax.f32 %v995_v13, 0.0 }
 0x226   :  { %v1030_v3 = vmax.f32 %v997_v17, 0.0 }
 0x227   :  { %v1045_v8 = vpack.c.bf16 %v1029_v31, %v1027_v26 }
 0x228   :  { %v1046_v32 = vpack.c.bf16 %v1030_v3, %v1028_v29 }
 0x22a   :  { %1270 = vmatprep.mubr.bf16.mxu1 %v1046_v32 }
 0x22b   :  { %1271 = vmatmul.mubr.bf16.gmra.mrb[28].mxu1 %v1045_v8 }
 0x26d   :  { %v1367_v11 = vpop.f32.mrb[0].mxu1 }
 0x26e   :  { %v1368_v20 = vpop.f32.mrb[1].mxu1 }
 0x26f   :  { %v1369_v56 = vadd.f32 %v1368_v20, %v1367_v11  ;;  %v1370_v63 = vpop.f32.mrb[2].mxu1 }
 0x270   :  { %v1371_v21 = vpop.f32.mrb[3].mxu1 }
 0x271   :  { %v1217_v23 = vadd.f32 %v1369_v56, %v2182_v52  ;;  %v1372_v62 = vadd.f32 %v1371_v21, %v1370_v63 }
 0x273   :  { %1279 = vst [vmem:[%s2255_s7] sm:$0xff] %v1217_v23  ;;  %v1220_v61 = vadd.f32 %v1372_v62, %v2182_v52 }
 0x275   :  { %1280 = vst [vmem:[%s2255_s7 + $0x8] sm:$0xff] %v1220_v61  ;;  %v1373_v37 = vpop.f32.mrb[4].mxu1 }
 0x276   :  { %v1374_v2 = vpop.f32.mrb[5].mxu1 }
 0x277   :  { %v1375_v4 = vadd.f32 %v1374_v2, %v1373_v37  ;;  %v1376_v10 = vpop.f32.mrb[6].mxu1 }
 0x278   :  { %v1377_v12 = vpop.f32.mrb[7].mxu1 }
 0x279   :  { %v1225_v24 = vadd.f32 %v1375_v4, %v2182_v52  ;;  %v1378_v33 = vadd.f32 %v1377_v12, %v1376_v10 }
 0x27b   :  { %1281 = vst [vmem:[%s2255_s7 + $0x10] sm:$0xff] %v1225_v24  ;;  %v1228_v28 = vadd.f32 %v1378_v33, %v2182_v52 }
 0x27d   :  { %1282 = vst [vmem:[%s2255_s7 + $0x18] sm:$0xff] %v1228_v28 }
 0x27e   :  { %v1379_v34 = vpop.f32.mrb[8].mxu1 }
 0x27f   :  { %v1380_v57 = vpop.f32.mrb[9].mxu1 }
 0x280   :  { %v1381_v41 = vadd.f32 %v1380_v57, %v1379_v34  ;;  %v1382_v58 = vpop.f32.mrb[10].mxu1 }
 0x281   :  { %v1383_v42 = vpop.f32.mrb[11].mxu1 }
 0x282   :  { %v1233_v49 = vadd.f32 %v1381_v41, %v2182_v52  ;;  %v1384_v9 = vadd.f32 %v1383_v42, %v1382_v58 }
 0x284   :  { %1283 = vst [vmem:[%s2255_s7 + $0x20] sm:$0xff] %v1233_v49  ;;  %v1236_v19 = vadd.f32 %v1384_v9, %v2182_v52 }
 0x286   :  { %1284 = vst [vmem:[%s2255_s7 + $0x28] sm:$0xff] %v1236_v19 }
 0x296   :  { %v1385_v6 = vpop.f32.mrb[12].mxu1 }
 0x297   :  { %v1386_v15 = vpop.f32.mrb[13].mxu1 }
 0x298   :  { %v1387_v50 = vadd.f32 %v1386_v15, %v1385_v6  ;;  %v1388_v7 = vpop.f32.mrb[14].mxu1 }
 0x299   :  { %v1389_v5 = vpop.f32.mrb[15].mxu1 }
 0x29a   :  { %v1241_v36 = vadd.f32 %v1387_v50, %v2182_v52  ;;  %v1390_v60 = vadd.f32 %v1389_v5, %v1388_v7 }
 0x29c   :  { %1285 = vst [vmem:[%s2255_s7 + $0x30] sm:$0xff] %v1241_v36  ;;  %v1244_v30 = vadd.f32 %v1390_v60, %v2182_v52 }
 0x29e   :  { %1286 = vst [vmem:[%s2255_s7 + $0x38] sm:$0xff] %v1244_v30 }
 0x2b2   :  { %v1391_v1 = vpop.f32.mrb[16].mxu1 }
 0x2b3   :  { %v1392_v45 = vpop.f32.mrb[17].mxu1 }
 0x2b4   :  { %v1393_v46 = vadd.f32 %v1392_v45, %v1391_v1  ;;  %v1394_v35 = vpop.f32.mrb[18].mxu1 }
 0x2b5   :  { %v1395_v51 = vpop.f32.mrb[19].mxu1 }
 0x2b6   :  { %v1249_v38 = vadd.f32 %v1393_v46, %v2182_v52  ;;  %v1396_v55 = vadd.f32 %v1395_v51, %v1394_v35 }
 0x2b8   :  { %1287 = vst [vmem:[%s2255_s7 + $0x40] sm:$0xff] %v1249_v38  ;;  %v1252_v18 = vadd.f32 %v1396_v55, %v2182_v52 }
 0x2ba   :  { %1288 = vst [vmem:[%s2255_s7 + $0x48] sm:$0xff] %v1252_v18 }
 0x2ca   :  { %v1397_v27 = vpop.f32.mrb[20].mxu1 }
 0x2cb   :  { %v1398_v39 = vpop.f32.mrb[21].mxu1 }
 0x2cc   :  { %v1399_v40 = vadd.f32 %v1398_v39, %v1397_v27  ;;  %v1400_v43 = vpop.f32.mrb[22].mxu1 }
 0x2cd   :  { %v1401_v59 = vpop.f32.mrb[23].mxu1 }
 0x2ce   :  { %v1257_v25 = vadd.f32 %v1399_v40, %v2182_v52  ;;  %v1402_v22 = vadd.f32 %v1401_v59, %v1400_v43 }
 0x2d0   :  { %1289 = vst [vmem:[%s2255_s7 + $0x50] sm:$0xff] %v1257_v25  ;;  %v1260_v47 = vadd.f32 %v1402_v22, %v2182_v52 }
 0x2d2   :  { %1290 = vst [vmem:[%s2255_s7 + $0x58] sm:$0xff] %v1260_v47 }
 0x2e2   :  { %v1403_v48 = vpop.f32.mrb[24].mxu1 }
 0x2e3   :  { %v1404_v53 = vpop.f32.mrb[25].mxu1 }
 0x2e4   :  { %v1405_v54 = vadd.f32 %v1404_v53, %v1403_v48  ;;  %v1406_v16 = vpop.f32.mrb[26].mxu1 }
 0x2e5   :  { %v1407_v44 = vpop.f32.mrb[27].mxu1 }
 0x2e6   :  { %v1265_v0 = vadd.f32 %v1405_v54, %v2182_v52  ;;  %v1408_v13 = vadd.f32 %v1407_v44, %v1406_v16 }
 0x2e8   :  { %1291 = vst [vmem:[%s2255_s7 + $0x60] sm:$0xff] %v1265_v0  ;;  %v1268_v14 = vadd.f32 %v1408_v13, %v2182_v52 }
 0x2ea   :  { %1292 = vst [vmem:[%s2255_s7 + $0x68] sm:$0xff] %v1268_v14 }
 0x2fe   :  { %v1409_v17 = vpop.f32.mrb[28].mxu1 }
 0x2ff   :  { %v1410_v26 = vpop.f32.mrb[29].mxu1 }
 0x300   :  { %v1411_v31 = vadd.f32 %v1410_v26, %v1409_v17  ;;  %v1412_v29 = vpop.f32.mrb[30].mxu1 }
 0x301   :  { %v1413_v3 = vpop.f32.mrb[31].mxu1 }
 0x302   :  { %v1273_v8 = vadd.f32 %v1411_v31, %v2182_v52  ;;  %v1414_v32 = vadd.f32 %v1413_v3, %v1412_v29 }
 0x304   :  { %1293 = vst [vmem:[%s2255_s7 + $0x70] sm:$0xff] %v1273_v8  ;;  %v1276_v11 = vadd.f32 %v1414_v32, %v2182_v52 }
 0x306   :  { %1294 = vst [vmem:[%s2255_s7 + $0x78] sm:$0xff] %v1276_v11 }

</bundles_post_ra>
